<compile_context>
chip_gen: v6e
topology: v6e:2x2x1
jax: 0.10.0
libtpu: 0.0.40
codegen_flags: <defaults>
</compile_context>

<pallas_src>
import jax
import jax.numpy as jnp
from jax.experimental import pallas as pl
from jax.experimental.pallas import tpu as pltpu


def indrnn_classifier_kernel(x_ref, wih_ref, bih_ref, u_ref, wp_ref, bp_ref,
                             o_ref, hn_ref, logit_ref, prob_ref):
    """x_ref: (T*B, D) time-major rows, wih_ref: (D, H), bih_ref/u_ref: (1, H),
       wp_ref: (H, C), bp_ref: (1, C), o_ref: (B, T, H), hn_ref: (B, H),
       logit_ref/prob_ref: (B, C)."""
    B, T, H = o_ref.shape

    # Input projection for ALL timesteps in one MXU pass (hoisted out of loop).
    # Rows [t*B:(t+1)*B] of `pre` correspond to timestep t (time-major blocks).
    pre = (jnp.dot(x_ref[...], wih_ref[...],
                   preferred_element_type=jnp.float32)
           + bih_ref[...])                                   # (T*B, H)

    # Hoisted load/broadcast of the recurrent weight.
    u = u_ref[...]                                           # (1, H)

    # Fully unrolled recurrence; h stays register-resident (one (B,H) tile).
    h = jnp.zeros((B, H), jnp.float32)
    for t in range(T):                                       # T static -> unrolled
        h = jnp.maximum(pre[t * B:(t + 1) * B, :] + u * h, 0.0)   # act='relu'
        # Write batch-first directly so the wrapper never transposes o.
        o_ref[:, t, :] = h.astype(o_ref.dtype)

    # hn = o[:, -1, :]  (== final hidden state for last_hidden=True)
    hn_ref[...] = h.astype(hn_ref.dtype)

    # predictor: Linear(hidden_size, num_class)
    logit = (jnp.dot(h, wp_ref[...], preferred_element_type=jnp.float32)
             + bp_ref[...])
    logit_ref[...] = logit.astype(logit_ref.dtype)

    # softmax(dim=-1) — exact reciprocal to preserve 1e-5 match with reference
    m = jnp.max(logit, axis=-1, keepdims=True)
    e = jnp.exp(logit - m)
    prob_ref[...] = (e * pl.reciprocal(jnp.sum(e, axis=-1, keepdims=True))
                     ).astype(prob_ref.dtype)


def indrnn_classifier(x_btd, w_ih, b_ih, u, w_pred, b_pred):
    """x_btd: (B, T, D) float32.  Returns (o, hn, logit, prob) batch-first."""
    B, T, D = x_btd.shape
    H = w_ih.shape[1]
    C = w_pred.shape[1]

    # Time-major flat rows for the single input-projection GEMM.  x is the
    # small tensor (B*T*D), so this transpose is negligible; the large tensor
    # o is produced batch-first by the kernel, so no post-kernel transpose.
    x_flat = jnp.transpose(x_btd, (1, 0, 2)).reshape(T * B, D)
    b_ih_2d = b_ih.reshape(1, H)
    u_2d = u.reshape(1, H)
    b_pred_2d = b_pred.reshape(1, C)

    full = lambda *shape: pl.BlockSpec(shape, lambda i: (0,) * len(shape))

    o, hn, logit, prob = pl.pallas_call(
        indrnn_classifier_kernel,
        out_shape=(
            jax.ShapeDtypeStruct((B, T, H), jnp.float32),
            jax.ShapeDtypeStruct((B, H), jnp.float32),
            jax.ShapeDtypeStruct((B, C), jnp.float32),
            jax.ShapeDtypeStruct((B, C), jnp.float32),
        ),
        grid_spec=pltpu.PrefetchScalarGridSpec(
            num_scalar_prefetch=0,
            grid=(1,),
            in_specs=[
                full(T * B, D),   # x (time-major rows)
                full(D, H),       # W_ih
                full(1, H),       # b_ih
                full(1, H),       # u (recurrent weight, elementwise)
                full(H, C),       # W_pred
                full(1, C),       # b_pred
            ],
            out_specs=[
                full(B, T, H),    # o (batch-first)
                full(B, H),       # hn
                full(B, C),       # logit
                full(B, C),       # prob
            ],
        ),
        # TODO(synk): at production sizes (e.g. T=784, H>=1k) add a T-blocked
        # grid axis so o streams out of VMEM, and a 'parallel' batch axis so
        # the second TensorCore on v7x is used.
        compiler_params=pltpu.CompilerParams(
            dimension_semantics=("arbitrary",)),
    )(x_flat, w_ih, b_ih_2d, u_2d, w_pred, b_pred_2d)

    return o, hn, logit, prob


def reference(x_btd, w_ih, b_ih, u, w_pred, b_pred):
    """Plain-JAX reference for correctness check."""
    B, T, D = x_btd.shape
    H = w_ih.shape[1]
    h = jnp.zeros((B, H), jnp.float32)
    outs = []
    for t in range(T):
        h = jnp.maximum(x_btd[:, t, :] @ w_ih + b_ih + u * h, 0.0)
        outs.append(h)
    o = jnp.stack(outs, axis=1)
    hn = o[:, -1, :]
    logit = hn @ w_pred + b_pred
    prob = jax.nn.softmax(logit, axis=-1)
    return o, hn, logit, prob


if __name__ == "__main__":
    # Small shapes consistent with the module: batch=8, seq=16, input_size=4,
    # hidden_size=32, num_class=10.
    B, T, D, H, C = 8, 16, 4, 32, 10
    TIME_STEP = 784
    hidden_max_abs = 2.0 ** (1.0 / TIME_STEP)
    hidden_min_abs = 0.5 ** (1.0 / TIME_STEP)

    key = jax.random.PRNGKey(0)
    kx, kw, ku, kp = jax.random.split(key, 4)

    x = jax.random.normal(kx, (B, T, D), jnp.float32)

    # init_ih='uniform/-0.001/0.001'
    w_ih = jax.random.uniform(kw, (D, H), jnp.float32, -0.001, 0.001)
    b_ih = jnp.zeros((H,), jnp.float32)
    # recurrent weight: uniform(hidden_min_abs, hidden_max_abs) (last layer init)
    u = jax.random.uniform(ku, (H,), jnp.float32, hidden_min_abs, hidden_max_abs)
    # predictor: xavier_uniform weight, zero bias
    limit = (6.0 / (H + C)) ** 0.5
    w_pred = jax.random.uniform(kp, (H, C), jnp.float32, -limit, limit)
    b_pred = jnp.zeros((C,), jnp.float32)

    o, hn, logit, prob = jax.jit(indrnn_classifier)(x, w_ih, b_ih, u, w_pred, b_pred)
    jax.block_until_ready((o, hn, logit, prob))

    o_r, hn_r, logit_r, prob_r = reference(x, w_ih, b_ih, u, w_pred, b_pred)
    assert jnp.allclose(o, o_r, atol=1e-5), "o mismatch"
    assert jnp.allclose(hn, hn_r, atol=1e-5), "hn mismatch"
    assert jnp.allclose(logit, logit_r, atol=1e-5), "logit mismatch"
    assert jnp.allclose(prob, prob_r, atol=1e-5), "prob mismatch"

    print("KERNEL_OK")
</pallas_src>

<mosaic_0001>
module attributes {stable_mosaic.version = 11 : i64} {
  func.func @indrnn_classifier_kernel(%arg0: i32, %arg1: memref<128x4xf32, #tpu.memory_space<vmem>>, %arg2: memref<4x32xf32, #tpu.memory_space<vmem>>, %arg3: memref<1x32xf32, #tpu.memory_space<vmem>>, %arg4: memref<1x32xf32, #tpu.memory_space<vmem>>, %arg5: memref<32x10xf32, #tpu.memory_space<vmem>>, %arg6: memref<1x10xf32, #tpu.memory_space<vmem>>, %arg7: memref<8x16x32xf32, #tpu.memory_space<vmem>>, %arg8: memref<8x32xf32, #tpu.memory_space<vmem>>, %arg9: memref<8x10xf32, #tpu.memory_space<vmem>>, %arg10: memref<8x10xf32, #tpu.memory_space<vmem>>) attributes {dimension_semantics = [#tpu.dimension_semantics<arbitrary>], iteration_bounds = array<i64: 1>, scalar_prefetch = 0 : i64, scratch_operands = 0 : i64, tpu.core_type = #tpu.core_type<tc>, window_params = [{pipeline_mode = #tpu.pipeline_mode<synchronous>, transform_indices = @transform_0, window_bounds = array<i64: 128, 4>}, {pipeline_mode = #tpu.pipeline_mode<synchronous>, transform_indices = @transform_1, window_bounds = array<i64: 4, 32>}, {pipeline_mode = #tpu.pipeline_mode<synchronous>, transform_indices = @transform_2, window_bounds = array<i64: 1, 32>}, {pipeline_mode = #tpu.pipeline_mode<synchronous>, transform_indices = @transform_3, window_bounds = array<i64: 1, 32>}, {pipeline_mode = #tpu.pipeline_mode<synchronous>, transform_indices = @transform_4, window_bounds = array<i64: 32, 10>}, {pipeline_mode = #tpu.pipeline_mode<synchronous>, transform_indices = @transform_5, window_bounds = array<i64: 1, 10>}, {pipeline_mode = #tpu.pipeline_mode<synchronous>, transform_indices = @transform_6, window_bounds = array<i64: 8, 16, 32>}, {pipeline_mode = #tpu.pipeline_mode<synchronous>, transform_indices = @transform_7, window_bounds = array<i64: 8, 32>}, {pipeline_mode = #tpu.pipeline_mode<synchronous>, transform_indices = @transform_8, window_bounds = array<i64: 8, 10>}, {pipeline_mode = #tpu.pipeline_mode<synchronous>, transform_indices = @transform_9, window_bounds = array<i64: 8, 10>}]} {
    %c0 = arith.constant 0 : index
    %c0_0 = arith.constant 0 : index
    %0 = vector.load %arg1[%c0, %c0_0] : memref<128x4xf32, #tpu.memory_space<vmem>>, vector<128x4xf32>
    %c0_1 = arith.constant 0 : index
    %c0_2 = arith.constant 0 : index
    %1 = vector.load %arg2[%c0_1, %c0_2] : memref<4x32xf32, #tpu.memory_space<vmem>>, vector<4x32xf32>
    %cst = arith.constant dense<0.000000e+00> : vector<128x32xf32>
    %2 = tpu.matmul %0, %1, %cst {dimension_numbers = #tpu.dot_dimension_numbers<[1], [0], [0], [1], [0, 0, 1, 1], [], []>} : vector<128x4xf32>, vector<4x32xf32>, vector<128x32xf32> -> vector<128x32xf32>
    %c0_3 = arith.constant 0 : index
    %c0_4 = arith.constant 0 : index
    %3 = vector.load %arg3[%c0_3, %c0_4] : memref<1x32xf32, #tpu.memory_space<vmem>>, vector<1x32xf32>
    %4 = vector.broadcast %3 : vector<1x32xf32> to vector<128x32xf32>
    %5 = arith.addf %2, %4 : vector<128x32xf32>
    %c0_5 = arith.constant 0 : index
    %c0_6 = arith.constant 0 : index
    %6 = vector.load %arg4[%c0_5, %c0_6] : memref<1x32xf32, #tpu.memory_space<vmem>>, vector<1x32xf32>
    %cst_7 = arith.constant 0.000000e+00 : f32
    %7 = vector.broadcast %cst_7 : f32 to vector<8x32xf32>
    %8 = vector.extract_strided_slice %5 {offsets = [0, 0], sizes = [8, 32], strides = [1, 1]} : vector<128x32xf32> to vector<8x32xf32>
    %9 = vector.broadcast %6 : vector<1x32xf32> to vector<8x32xf32>
    %10 = arith.mulf %9, %7 : vector<8x32xf32>
    %11 = arith.addf %8, %10 : vector<8x32xf32>
    %cst_8 = arith.constant 0.000000e+00 : f32
    %12 = vector.broadcast %cst_8 : f32 to vector<8x32xf32>
    %13 = arith.maximumf %11, %12 : vector<8x32xf32>
    %c0_9 = arith.constant 0 : index
    %c0_10 = arith.constant 0 : index
    %c0_11 = arith.constant 0 : index
    %14 = vector.load %arg7[%c0_9, %c0_10, %c0_11] : memref<8x16x32xf32, #tpu.memory_space<vmem>>, vector<8x1x32xf32>
    %15 = vector.shape_cast %14 : vector<8x1x32xf32> to vector<8x32xf32>
    %16 = vector.shape_cast %13 : vector<8x32xf32> to vector<8x1x32xf32>
    tpu.vector_store %arg7[%c0_9, %c0_10, %c0_11], %16 {strides = array<i32>} : memref<8x16x32xf32, #tpu.memory_space<vmem>>, vector<8x1x32xf32>,
    %17 = vector.extract_strided_slice %5 {offsets = [8, 0], sizes = [8, 32], strides = [1, 1]} : vector<128x32xf32> to vector<8x32xf32>
    %18 = vector.broadcast %6 : vector<1x32xf32> to vector<8x32xf32>
    %19 = arith.mulf %18, %13 : vector<8x32xf32>
    %20 = arith.addf %17, %19 : vector<8x32xf32>
    %cst_12 = arith.constant 0.000000e+00 : f32
    %21 = vector.broadcast %cst_12 : f32 to vector<8x32xf32>
    %22 = arith.maximumf %20, %21 : vector<8x32xf32>
    %c0_13 = arith.constant 0 : index
    %c1 = arith.constant 1 : index
    %c0_14 = arith.constant 0 : index
    %23 = vector.load %arg7[%c0_13, %c1, %c0_14] : memref<8x16x32xf32, #tpu.memory_space<vmem>>, vector<8x1x32xf32>
    %24 = vector.shape_cast %23 : vector<8x1x32xf32> to vector<8x32xf32>
    %25 = vector.shape_cast %22 : vector<8x32xf32> to vector<8x1x32xf32>
    tpu.vector_store %arg7[%c0_13, %c1, %c0_14], %25 {strides = array<i32>} : memref<8x16x32xf32, #tpu.memory_space<vmem>>, vector<8x1x32xf32>,
    %26 = vector.extract_strided_slice %5 {offsets = [16, 0], sizes = [8, 32], strides = [1, 1]} : vector<128x32xf32> to vector<8x32xf32>
    %27 = vector.broadcast %6 : vector<1x32xf32> to vector<8x32xf32>
    %28 = arith.mulf %27, %22 : vector<8x32xf32>
    %29 = arith.addf %26, %28 : vector<8x32xf32>
    %cst_15 = arith.constant 0.000000e+00 : f32
    %30 = vector.broadcast %cst_15 : f32 to vector<8x32xf32>
    %31 = arith.maximumf %29, %30 : vector<8x32xf32>
    %c0_16 = arith.constant 0 : index
    %c2 = arith.constant 2 : index
    %c0_17 = arith.constant 0 : index
    %32 = vector.load %arg7[%c0_16, %c2, %c0_17] : memref<8x16x32xf32, #tpu.memory_space<vmem>>, vector<8x1x32xf32>
    %33 = vector.shape_cast %32 : vector<8x1x32xf32> to vector<8x32xf32>
    %34 = vector.shape_cast %31 : vector<8x32xf32> to vector<8x1x32xf32>
    tpu.vector_store %arg7[%c0_16, %c2, %c0_17], %34 {strides = array<i32>} : memref<8x16x32xf32, #tpu.memory_space<vmem>>, vector<8x1x32xf32>,
    %35 = vector.extract_strided_slice %5 {offsets = [24, 0], sizes = [8, 32], strides = [1, 1]} : vector<128x32xf32> to vector<8x32xf32>
    %36 = vector.broadcast %6 : vector<1x32xf32> to vector<8x32xf32>
    %37 = arith.mulf %36, %31 : vector<8x32xf32>
    %38 = arith.addf %35, %37 : vector<8x32xf32>
    %cst_18 = arith.constant 0.000000e+00 : f32
    %39 = vector.broadcast %cst_18 : f32 to vector<8x32xf32>
    %40 = arith.maximumf %38, %39 : vector<8x32xf32>
    %c0_19 = arith.constant 0 : index
    %c3 = arith.constant 3 : index
    %c0_20 = arith.constant 0 : index
    %41 = vector.load %arg7[%c0_19, %c3, %c0_20] : memref<8x16x32xf32, #tpu.memory_space<vmem>>, vector<8x1x32xf32>
    %42 = vector.shape_cast %41 : vector<8x1x32xf32> to vector<8x32xf32>
    %43 = vector.shape_cast %40 : vector<8x32xf32> to vector<8x1x32xf32>
    tpu.vector_store %arg7[%c0_19, %c3, %c0_20], %43 {strides = array<i32>} : memref<8x16x32xf32, #tpu.memory_space<vmem>>, vector<8x1x32xf32>,
    %44 = vector.extract_strided_slice %5 {offsets = [32, 0], sizes = [8, 32], strides = [1, 1]} : vector<128x32xf32> to vector<8x32xf32>
    %45 = vector.broadcast %6 : vector<1x32xf32> to vector<8x32xf32>
    %46 = arith.mulf %45, %40 : vector<8x32xf32>
    %47 = arith.addf %44, %46 : vector<8x32xf32>
    %cst_21 = arith.constant 0.000000e+00 : f32
    %48 = vector.broadcast %cst_21 : f32 to vector<8x32xf32>
    %49 = arith.maximumf %47, %48 : vector<8x32xf32>
    %c0_22 = arith.constant 0 : index
    %c4 = arith.constant 4 : index
    %c0_23 = arith.constant 0 : index
    %50 = vector.load %arg7[%c0_22, %c4, %c0_23] : memref<8x16x32xf32, #tpu.memory_space<vmem>>, vector<8x1x32xf32>
    %51 = vector.shape_cast %50 : vector<8x1x32xf32> to vector<8x32xf32>
    %52 = vector.shape_cast %49 : vector<8x32xf32> to vector<8x1x32xf32>
    tpu.vector_store %arg7[%c0_22, %c4, %c0_23], %52 {strides = array<i32>} : memref<8x16x32xf32, #tpu.memory_space<vmem>>, vector<8x1x32xf32>,
    %53 = vector.extract_strided_slice %5 {offsets = [40, 0], sizes = [8, 32], strides = [1, 1]} : vector<128x32xf32> to vector<8x32xf32>
    %54 = vector.broadcast %6 : vector<1x32xf32> to vector<8x32xf32>
    %55 = arith.mulf %54, %49 : vector<8x32xf32>
    %56 = arith.addf %53, %55 : vector<8x32xf32>
    %cst_24 = arith.constant 0.000000e+00 : f32
    %57 = vector.broadcast %cst_24 : f32 to vector<8x32xf32>
    %58 = arith.maximumf %56, %57 : vector<8x32xf32>
    %c0_25 = arith.constant 0 : index
    %c5 = arith.constant 5 : index
    %c0_26 = arith.constant 0 : index
    %59 = vector.load %arg7[%c0_25, %c5, %c0_26] : memref<8x16x32xf32, #tpu.memory_space<vmem>>, vector<8x1x32xf32>
    %60 = vector.shape_cast %59 : vector<8x1x32xf32> to vector<8x32xf32>
    %61 = vector.shape_cast %58 : vector<8x32xf32> to vector<8x1x32xf32>
    tpu.vector_store %arg7[%c0_25, %c5, %c0_26], %61 {strides = array<i32>} : memref<8x16x32xf32, #tpu.memory_space<vmem>>, vector<8x1x32xf32>,
    %62 = vector.extract_strided_slice %5 {offsets = [48, 0], sizes = [8, 32], strides = [1, 1]} : vector<128x32xf32> to vector<8x32xf32>
    %63 = vector.broadcast %6 : vector<1x32xf32> to vector<8x32xf32>
    %64 = arith.mulf %63, %58 : vector<8x32xf32>
    %65 = arith.addf %62, %64 : vector<8x32xf32>
    %cst_27 = arith.constant 0.000000e+00 : f32
    %66 = vector.broadcast %cst_27 : f32 to vector<8x32xf32>
    %67 = arith.maximumf %65, %66 : vector<8x32xf32>
    %c0_28 = arith.constant 0 : index
    %c6 = arith.constant 6 : index
    %c0_29 = arith.constant 0 : index
    %68 = vector.load %arg7[%c0_28, %c6, %c0_29] : memref<8x16x32xf32, #tpu.memory_space<vmem>>, vector<8x1x32xf32>
    %69 = vector.shape_cast %68 : vector<8x1x32xf32> to vector<8x32xf32>
    %70 = vector.shape_cast %67 : vector<8x32xf32> to vector<8x1x32xf32>
    tpu.vector_store %arg7[%c0_28, %c6, %c0_29], %70 {strides = array<i32>} : memref<8x16x32xf32, #tpu.memory_space<vmem>>, vector<8x1x32xf32>,
    %71 = vector.extract_strided_slice %5 {offsets = [56, 0], sizes = [8, 32], strides = [1, 1]} : vector<128x32xf32> to vector<8x32xf32>
    %72 = vector.broadcast %6 : vector<1x32xf32> to vector<8x32xf32>
    %73 = arith.mulf %72, %67 : vector<8x32xf32>
    %74 = arith.addf %71, %73 : vector<8x32xf32>
    %cst_30 = arith.constant 0.000000e+00 : f32
    %75 = vector.broadcast %cst_30 : f32 to vector<8x32xf32>
    %76 = arith.maximumf %74, %75 : vector<8x32xf32>
    %c0_31 = arith.constant 0 : index
    %c7 = arith.constant 7 : index
    %c0_32 = arith.constant 0 : index
    %77 = vector.load %arg7[%c0_31, %c7, %c0_32] : memref<8x16x32xf32, #tpu.memory_space<vmem>>, vector<8x1x32xf32>
    %78 = vector.shape_cast %77 : vector<8x1x32xf32> to vector<8x32xf32>
    %79 = vector.shape_cast %76 : vector<8x32xf32> to vector<8x1x32xf32>
    tpu.vector_store %arg7[%c0_31, %c7, %c0_32], %79 {strides = array<i32>} : memref<8x16x32xf32, #tpu.memory_space<vmem>>, vector<8x1x32xf32>,
    %80 = vector.extract_strided_slice %5 {offsets = [64, 0], sizes = [8, 32], strides = [1, 1]} : vector<128x32xf32> to vector<8x32xf32>
    %81 = vector.broadcast %6 : vector<1x32xf32> to vector<8x32xf32>
    %82 = arith.mulf %81, %76 : vector<8x32xf32>
    %83 = arith.addf %80, %82 : vector<8x32xf32>
    %cst_33 = arith.constant 0.000000e+00 : f32
    %84 = vector.broadcast %cst_33 : f32 to vector<8x32xf32>
    %85 = arith.maximumf %83, %84 : vector<8x32xf32>
    %c0_34 = arith.constant 0 : index
    %c8 = arith.constant 8 : index
    %c0_35 = arith.constant 0 : index
    %86 = vector.load %arg7[%c0_34, %c8, %c0_35] : memref<8x16x32xf32, #tpu.memory_space<vmem>>, vector<8x1x32xf32>
    %87 = vector.shape_cast %86 : vector<8x1x32xf32> to vector<8x32xf32>
    %88 = vector.shape_cast %85 : vector<8x32xf32> to vector<8x1x32xf32>
    tpu.vector_store %arg7[%c0_34, %c8, %c0_35], %88 {strides = array<i32>} : memref<8x16x32xf32, #tpu.memory_space<vmem>>, vector<8x1x32xf32>,
    %89 = vector.extract_strided_slice %5 {offsets = [72, 0], sizes = [8, 32], strides = [1, 1]} : vector<128x32xf32> to vector<8x32xf32>
    %90 = vector.broadcast %6 : vector<1x32xf32> to vector<8x32xf32>
    %91 = arith.mulf %90, %85 : vector<8x32xf32>
    %92 = arith.addf %89, %91 : vector<8x32xf32>
    %cst_36 = arith.constant 0.000000e+00 : f32
    %93 = vector.broadcast %cst_36 : f32 to vector<8x32xf32>
    %94 = arith.maximumf %92, %93 : vector<8x32xf32>
    %c0_37 = arith.constant 0 : index
    %c9 = arith.constant 9 : index
    %c0_38 = arith.constant 0 : index
    %95 = vector.load %arg7[%c0_37, %c9, %c0_38] : memref<8x16x32xf32, #tpu.memory_space<vmem>>, vector<8x1x32xf32>
    %96 = vector.shape_cast %95 : vector<8x1x32xf32> to vector<8x32xf32>
    %97 = vector.shape_cast %94 : vector<8x32xf32> to vector<8x1x32xf32>
    tpu.vector_store %arg7[%c0_37, %c9, %c0_38], %97 {strides = array<i32>} : memref<8x16x32xf32, #tpu.memory_space<vmem>>, vector<8x1x32xf32>,
    %98 = vector.extract_strided_slice %5 {offsets = [80, 0], sizes = [8, 32], strides = [1, 1]} : vector<128x32xf32> to vector<8x32xf32>
    %99 = vector.broadcast %6 : vector<1x32xf32> to vector<8x32xf32>
    %100 = arith.mulf %99, %94 : vector<8x32xf32>
    %101 = arith.addf %98, %100 : vector<8x32xf32>
    %cst_39 = arith.constant 0.000000e+00 : f32
    %102 = vector.broadcast %cst_39 : f32 to vector<8x32xf32>
    %103 = arith.maximumf %101, %102 : vector<8x32xf32>
    %c0_40 = arith.constant 0 : index
    %c10 = arith.constant 10 : index
    %c0_41 = arith.constant 0 : index
    %104 = vector.load %arg7[%c0_40, %c10, %c0_41] : memref<8x16x32xf32, #tpu.memory_space<vmem>>, vector<8x1x32xf32>
    %105 = vector.shape_cast %104 : vector<8x1x32xf32> to vector<8x32xf32>
    %106 = vector.shape_cast %103 : vector<8x32xf32> to vector<8x1x32xf32>
    tpu.vector_store %arg7[%c0_40, %c10, %c0_41], %106 {strides = array<i32>} : memref<8x16x32xf32, #tpu.memory_space<vmem>>, vector<8x1x32xf32>,
    %107 = vector.extract_strided_slice %5 {offsets = [88, 0], sizes = [8, 32], strides = [1, 1]} : vector<128x32xf32> to vector<8x32xf32>
    %108 = vector.broadcast %6 : vector<1x32xf32> to vector<8x32xf32>
    %109 = arith.mulf %108, %103 : vector<8x32xf32>
    %110 = arith.addf %107, %109 : vector<8x32xf32>
    %cst_42 = arith.constant 0.000000e+00 : f32
    %111 = vector.broadcast %cst_42 : f32 to vector<8x32xf32>
    %112 = arith.maximumf %110, %111 : vector<8x32xf32>
    %c0_43 = arith.constant 0 : index
    %c11 = arith.constant 11 : index
    %c0_44 = arith.constant 0 : index
    %113 = vector.load %arg7[%c0_43, %c11, %c0_44] : memref<8x16x32xf32, #tpu.memory_space<vmem>>, vector<8x1x32xf32>
    %114 = vector.shape_cast %113 : vector<8x1x32xf32> to vector<8x32xf32>
    %115 = vector.shape_cast %112 : vector<8x32xf32> to vector<8x1x32xf32>
    tpu.vector_store %arg7[%c0_43, %c11, %c0_44], %115 {strides = array<i32>} : memref<8x16x32xf32, #tpu.memory_space<vmem>>, vector<8x1x32xf32>,
    %116 = vector.extract_strided_slice %5 {offsets = [96, 0], sizes = [8, 32], strides = [1, 1]} : vector<128x32xf32> to vector<8x32xf32>
    %117 = vector.broadcast %6 : vector<1x32xf32> to vector<8x32xf32>
    %118 = arith.mulf %117, %112 : vector<8x32xf32>
    %119 = arith.addf %116, %118 : vector<8x32xf32>
    %cst_45 = arith.constant 0.000000e+00 : f32
    %120 = vector.broadcast %cst_45 : f32 to vector<8x32xf32>
    %121 = arith.maximumf %119, %120 : vector<8x32xf32>
    %c0_46 = arith.constant 0 : index
    %c12 = arith.constant 12 : index
    %c0_47 = arith.constant 0 : index
    %122 = vector.load %arg7[%c0_46, %c12, %c0_47] : memref<8x16x32xf32, #tpu.memory_space<vmem>>, vector<8x1x32xf32>
    %123 = vector.shape_cast %122 : vector<8x1x32xf32> to vector<8x32xf32>
    %124 = vector.shape_cast %121 : vector<8x32xf32> to vector<8x1x32xf32>
    tpu.vector_store %arg7[%c0_46, %c12, %c0_47], %124 {strides = array<i32>} : memref<8x16x32xf32, #tpu.memory_space<vmem>>, vector<8x1x32xf32>,
    %125 = vector.extract_strided_slice %5 {offsets = [104, 0], sizes = [8, 32], strides = [1, 1]} : vector<128x32xf32> to vector<8x32xf32>
    %126 = vector.broadcast %6 : vector<1x32xf32> to vector<8x32xf32>
    %127 = arith.mulf %126, %121 : vector<8x32xf32>
    %128 = arith.addf %125, %127 : vector<8x32xf32>
    %cst_48 = arith.constant 0.000000e+00 : f32
    %129 = vector.broadcast %cst_48 : f32 to vector<8x32xf32>
    %130 = arith.maximumf %128, %129 : vector<8x32xf32>
    %c0_49 = arith.constant 0 : index
    %c13 = arith.constant 13 : index
    %c0_50 = arith.constant 0 : index
    %131 = vector.load %arg7[%c0_49, %c13, %c0_50] : memref<8x16x32xf32, #tpu.memory_space<vmem>>, vector<8x1x32xf32>
    %132 = vector.shape_cast %131 : vector<8x1x32xf32> to vector<8x32xf32>
    %133 = vector.shape_cast %130 : vector<8x32xf32> to vector<8x1x32xf32>
    tpu.vector_store %arg7[%c0_49, %c13, %c0_50], %133 {strides = array<i32>} : memref<8x16x32xf32, #tpu.memory_space<vmem>>, vector<8x1x32xf32>,
    %134 = vector.extract_strided_slice %5 {offsets = [112, 0], sizes = [8, 32], strides = [1, 1]} : vector<128x32xf32> to vector<8x32xf32>
    %135 = vector.broadcast %6 : vector<1x32xf32> to vector<8x32xf32>
    %136 = arith.mulf %135, %130 : vector<8x32xf32>
    %137 = arith.addf %134, %136 : vector<8x32xf32>
    %cst_51 = arith.constant 0.000000e+00 : f32
    %138 = vector.broadcast %cst_51 : f32 to vector<8x32xf32>
    %139 = arith.maximumf %137, %138 : vector<8x32xf32>
    %c0_52 = arith.constant 0 : index
    %c14 = arith.constant 14 : index
    %c0_53 = arith.constant 0 : index
    %140 = vector.load %arg7[%c0_52, %c14, %c0_53] : memref<8x16x32xf32, #tpu.memory_space<vmem>>, vector<8x1x32xf32>
    %141 = vector.shape_cast %140 : vector<8x1x32xf32> to vector<8x32xf32>
    %142 = vector.shape_cast %139 : vector<8x32xf32> to vector<8x1x32xf32>
    tpu.vector_store %arg7[%c0_52, %c14, %c0_53], %142 {strides = array<i32>} : memref<8x16x32xf32, #tpu.memory_space<vmem>>, vector<8x1x32xf32>,
    %143 = vector.extract_strided_slice %5 {offsets = [120, 0], sizes = [8, 32], strides = [1, 1]} : vector<128x32xf32> to vector<8x32xf32>
    %144 = vector.broadcast %6 : vector<1x32xf32> to vector<8x32xf32>
    %145 = arith.mulf %144, %139 : vector<8x32xf32>
    %146 = arith.addf %143, %145 : vector<8x32xf32>
    %cst_54 = arith.constant 0.000000e+00 : f32
    %147 = vector.broadcast %cst_54 : f32 to vector<8x32xf32>
    %148 = arith.maximumf %146, %147 : vector<8x32xf32>
    %c0_55 = arith.constant 0 : index
    %c15 = arith.constant 15 : index
    %c0_56 = arith.constant 0 : index
    %149 = vector.load %arg7[%c0_55, %c15, %c0_56] : memref<8x16x32xf32, #tpu.memory_space<vmem>>, vector<8x1x32xf32>
    %150 = vector.shape_cast %149 : vector<8x1x32xf32> to vector<8x32xf32>
    %151 = vector.shape_cast %148 : vector<8x32xf32> to vector<8x1x32xf32>
    tpu.vector_store %arg7[%c0_55, %c15, %c0_56], %151 {strides = array<i32>} : memref<8x16x32xf32, #tpu.memory_space<vmem>>, vector<8x1x32xf32>,
    %c0_57 = arith.constant 0 : index
    %c0_58 = arith.constant 0 : index
    %152 = vector.load %arg8[%c0_57, %c0_58] : memref<8x32xf32, #tpu.memory_space<vmem>>, vector<8x32xf32>
    tpu.vector_store %arg8[%c0_57, %c0_58], %148 {strides = array<i32>} : memref<8x32xf32, #tpu.memory_space<vmem>>, vector<8x32xf32>,
    %c0_59 = arith.constant 0 : index
    %c0_60 = arith.constant 0 : index
    %153 = vector.load %arg5[%c0_59, %c0_60] : memref<32x10xf32, #tpu.memory_space<vmem>>, vector<32x10xf32>
    %cst_61 = arith.constant dense<0.000000e+00> : vector<8x10xf32>
    %154 = tpu.matmul %148, %153, %cst_61 {dimension_numbers = #tpu.dot_dimension_numbers<[1], [0], [0], [1], [0, 0, 1, 1], [], []>} : vector<8x32xf32>, vector<32x10xf32>, vector<8x10xf32> -> vector<8x10xf32>
    %c0_62 = arith.constant 0 : index
    %c0_63 = arith.constant 0 : index
    %155 = vector.load %arg6[%c0_62, %c0_63] : memref<1x10xf32, #tpu.memory_space<vmem>>, vector<1x10xf32>
    %156 = vector.broadcast %155 : vector<1x10xf32> to vector<8x10xf32>
    %157 = arith.addf %154, %156 : vector<8x10xf32>
    %c0_64 = arith.constant 0 : index
    %c0_65 = arith.constant 0 : index
    %158 = vector.load %arg9[%c0_64, %c0_65] : memref<8x10xf32, #tpu.memory_space<vmem>>, vector<8x10xf32>
    tpu.vector_store %arg9[%c0_64, %c0_65], %157 {strides = array<i32>} : memref<8x10xf32, #tpu.memory_space<vmem>>, vector<8x10xf32>,
    %cst_66 = arith.constant dense<0xFF800000> : vector<8xf32>
    %159 = vector.multi_reduction <maximumf>, %157, %cst_66 [1] : vector<8x10xf32> to vector<8xf32>
    %160 = vector.shape_cast %159 : vector<8xf32> to vector<8x1xf32>
    %161 = vector.broadcast %160 : vector<8x1xf32> to vector<8x10xf32>
    %162 = arith.subf %157, %161 : vector<8x10xf32>
    %163 = math.exp %162 : vector<8x10xf32>
    %cst_67 = arith.constant dense<0.000000e+00> : vector<8xf32>
    %164 = vector.multi_reduction <add>, %163, %cst_67 [1] : vector<8x10xf32> to vector<8xf32>
    %165 = vector.shape_cast %164 : vector<8xf32> to vector<8x1xf32>
    %166 = tpu.reciprocal %165 : vector<8x1xf32> -> vector<8x1xf32>
    %167 = vector.broadcast %166 : vector<8x1xf32> to vector<8x10xf32>
    %168 = arith.mulf %163, %167 : vector<8x10xf32>
    %c0_68 = arith.constant 0 : index
    %c0_69 = arith.constant 0 : index
    %169 = vector.load %arg10[%c0_68, %c0_69] : memref<8x10xf32, #tpu.memory_space<vmem>>, vector<8x10xf32>
    tpu.vector_store %arg10[%c0_68, %c0_69], %168 {strides = array<i32>} : memref<8x10xf32, #tpu.memory_space<vmem>>, vector<8x10xf32>,
    return
  }
  func.func @transform_0(%arg0: i32) -> (i32, i32) {
    %c0_i32 = arith.constant 0 : i32
    %c0_i32_0 = arith.constant 0 : i32
    %c0_i32_1 = arith.constant 0 : i32
    return %c0_i32, %c0_i32_0 : i32, i32
  }
  func.func @transform_1(%arg0: i32) -> (i32, i32) {
    %c0_i32 = arith.constant 0 : i32
    %c0_i32_0 = arith.constant 0 : i32
    %c0_i32_1 = arith.constant 0 : i32
    return %c0_i32, %c0_i32_0 : i32, i32
  }
  func.func @transform_2(%arg0: i32) -> (i32, i32) {
    %c0_i32 = arith.constant 0 : i32
    %c0_i32_0 = arith.constant 0 : i32
    %c0_i32_1 = arith.constant 0 : i32
    return %c0_i32, %c0_i32_0 : i32, i32
  }
  func.func @transform_3(%arg0: i32) -> (i32, i32) {
    %c0_i32 = arith.constant 0 : i32
    %c0_i32_0 = arith.constant 0 : i32
    %c0_i32_1 = arith.constant 0 : i32
    return %c0_i32, %c0_i32_0 : i32, i32
  }
  func.func @transform_4(%arg0: i32) -> (i32, i32) {
    %c0_i32 = arith.constant 0 : i32
    %c0_i32_0 = arith.constant 0 : i32
    %c0_i32_1 = arith.constant 0 : i32
    return %c0_i32, %c0_i32_0 : i32, i32
  }
  func.func @transform_5(%arg0: i32) -> (i32, i32) {
    %c0_i32 = arith.constant 0 : i32
    %c0_i32_0 = arith.constant 0 : i32
    %c0_i32_1 = arith.constant 0 : i32
    return %c0_i32, %c0_i32_0 : i32, i32
  }
  func.func @transform_6(%arg0: i32) -> (i32, i32, i32) {
    %c0_i32 = arith.constant 0 : i32
    %c0_i32_0 = arith.constant 0 : i32
    %c0_i32_1 = arith.constant 0 : i32
    %c0_i32_2 = arith.constant 0 : i32
    return %c0_i32, %c0_i32_0, %c0_i32_1 : i32, i32, i32
  }
  func.func @transform_7(%arg0: i32) -> (i32, i32) {
    %c0_i32 = arith.constant 0 : i32
    %c0_i32_0 = arith.constant 0 : i32
    %c0_i32_1 = arith.constant 0 : i32
    return %c0_i32, %c0_i32_0 : i32, i32
  }
  func.func @transform_8(%arg0: i32) -> (i32, i32) {
    %c0_i32 = arith.constant 0 : i32
    %c0_i32_0 = arith.constant 0 : i32
    %c0_i32_1 = arith.constant 0 : i32
    return %c0_i32, %c0_i32_0 : i32, i32
  }
  func.func @transform_9(%arg0: i32) -> (i32, i32) {
    %c0_i32 = arith.constant 0 : i32
    %c0_i32_0 = arith.constant 0 : i32
    %c0_i32_1 = arith.constant 0 : i32
    return %c0_i32, %c0_i32_0 : i32, i32
  }
}

</mosaic_0001>

<bundles_post_ra>
// kernel: indrnn_classifier.1
= control target key start
LH: loop header
LB: loop body
LE: loop exit
PB: predicated region body
PF: predicated region fallthrough
CT: control target
= control target key end

     0   :  { %15 = vsyncpa [#allocation3], 0  ;;  %s2128_s0 = inlined_call_operand.vmem [shape: f32[128,4], index: 0, kind: input, shape index: {}]   ;;  %s2129_s1 = inlined_call_operand.vmem [shape: f32[4,32], index: 1, kind: input, shape index: {}]   ;;  %s2130_s2 = inlined_call_operand.vmem [shape: f32[1,32], index: 2, kind: input, shape index: {}]   ;;  %s2131_s3 = inlined_call_operand.vmem [shape: f32[1,32], index: 3, kind: input, shape index: {}]   ;;  %s2132_s4 = inlined_call_operand.vmem [shape: f32[32,10], index: 4, kind: input, shape index: {}]   ;;  %s2133_s5 = inlined_call_operand.vmem [shape: f32[1,10], index: 5, kind: input, shape index: {}]   ;;  %s2134_s6 = inlined_call_operand.hbm [shape: f32[8,16,32], index: 6, kind: output, shape index: {0}]   ;;  %s2135_s7 = inlined_call_operand.hbm [shape: f32[8,32], index: 7, kind: output, shape index: {1}]   ;;  %s2136_s8 = inlined_call_operand.hbm [shape: f32[8,10], index: 8, kind: output, shape index: {2}]   ;;  %s2137_s9 = inlined_call_operand.hbm [shape: f32[8,10], index: 9, kind: output, shape index: {3}]  }
   0x1   :  { %16 = vsyncpa [#allocation5], 0  ;;  %v46_v0 = vld [vmem:[%s2129_s1] sm:$0xf]  ;;  %vm103_vm0 = vcmask 1043456   ;;  %vm54_vm1 = vcmask 31744  }
   0x2   :  { %v30_v1 = vld [vmem:[%s2128_s0] sm:$0xff]  ;;  %v31_v2 = vld [vmem:[%s2128_s0 + $0x8] sm:$0xff]  ;;  %1563 = vmatprep.subr.msk.mxu0 %vm103_vm0, %v46_v0  ;;  %v32_v3 = vld [vmem:[%s2128_s0 + $0x10] sm:$0xff]  ;;  %1600 = vmatprep.subr.msk.mxu1 %vm103_vm0, %v46_v0 }
   0x3   :  { %1565 = vmatprep.mubr.msk.f32.mxu0 %vm54_vm1, %v30_v1  ;;  %1564 = vmatpush3.msk.msra.mxu0 %vm103_vm0, %v46_v0  ;;  %v40_v4 = vld [vmem:[%s2128_s0 + $0x50] sm:$0xff]  ;;  %v33_v5 = vld [vmem:[%s2128_s0 + $0x18] sm:$0xff]  ;;  %v42_v7 = vld [vmem:[%s2128_s0 + $0x60] sm:$0xff] }
   0x4   :  { %1566 = vmatmul.mubr.msk.f32.vlgmr.msra.gmra.mxu0 %vm54_vm1, %v31_v2  ;;  %1601 = vmatpush3.msk.msra.mxu1 %vm103_vm0, %v46_v0  ;;  %v41_v6 = vld [vmem:[%s2128_s0 + $0x58] sm:$0xff]  ;;  %v34_v8 = vld [vmem:[%s2128_s0 + $0x20] sm:$0xff] }
   0x5   :  { %1568 = vmatprep.mubr.msk.f32.mxu0 %vm54_vm1, %v32_v3  ;;  %1580 = vmatprep.mubr.msk.f32.mxu1 %vm54_vm1, %v40_v4 }
   0x6   :  { %1581 = vmatmul.mubr.msk.f32.vlgmr.msra.gmra.mxu1 %vm54_vm1, %v41_v6 }
   0x7   :  { %17 = vsyncpa [#allocation8], 0  ;;  %1583 = vmatprep.mubr.msk.f32.mxu1 %vm54_vm1, %v42_v7  ;;  %v43_v9 = vld [vmem:[%s2128_s0 + $0x68] sm:$0xff]  ;;  %v44_v10 = vld [vmem:[%s2128_s0 + $0x70] sm:$0xff]  ;;  %v1701_v17 = vmov 0.0   ;;  %vm1702_vm2 = vmmov 0   ;;  %v267_v24 = vlaneseq }
   0x8   :  { %1569 = vmatmul.mubr.msk.f32.gmra.mxu0 %vm54_vm1, %v33_v5  ;;  %v35_v11 = vld [vmem:[%s2128_s0 + $0x28] sm:$0xff]  ;;  %v36_v12 = vld [vmem:[%s2128_s0 + $0x30] sm:$0xff]  ;;  %v45_v13 = vld [vmem:[%s2128_s0 + $0x78] sm:$0xff]  ;;  %1589 = vmatprep.subr.mxu1 %v1701_v17  ;;  %v1703_v22 = vmov 1966171168   ;;  %vm320_vm3 = vcmask 253952  }
   0x9   :  { %1571 = vmatprep.mubr.msk.f32.mxu0 %vm54_vm1, %v34_v8  ;;  %v37_v14 = vld [vmem:[%s2128_s0 + $0x38] sm:$0xff]  ;;  %v38_v15 = vld [vmem:[%s2128_s0 + $0x40] sm:$0xff]  ;;  %v39_v16 = vld [vmem:[%s2128_s0 + $0x48] sm:$0xff]  ;;  %v265_v23 = vunpack.c.l.s4 %v1703_v22  ;;  %v268_v29 = vshrl.u32 %v267_v24, 7  ;;  %vm1364_vm4 = vcmask 261120   ;;  %vm1449_vm5 = vcmask 80896  }
   0xa   :  { %1584 = vmatmul.mubr.msk.f32.gmra.mxu1 %vm54_vm1, %v43_v9  ;;  %v1369_v18 = vld [vmem:[%s2132_s4 + $0x18] sm:$0xff]  ;;  %v1368_v19 = vld [vmem:[%s2132_s4 + $0x10] sm:$0xff]  ;;  %v1367_v20 = vld [vmem:[%s2132_s4 + $0x8] sm:$0xff] }
   0xb   :  { %1586 = vmatprep.mubr.msk.f32.mxu1 %vm54_vm1, %v44_v10  ;;  %1590 = vmatpush3.msra.mxu1 %v1369_v18  ;;  %v1366_v21 = vld [vmem:[%s2132_s4] sm:$0xff]  ;;  %v266_v28 = vunpack.c.0.s8 %v265_v23  ;;  %s1704_s4 = smov [#allocation4]  }
   0xc   :  { %1572 = vmatmul.mubr.msk.f32.gmra.mxu0 %vm54_vm1, %v35_v11  ;;  %1591 = vmatprep.subr.mxu1 %v1701_v17  ;;  %v1842_v25 = vld [vmem:[%s2131_s3] ss:$0 sm:$0xff]  ;;  %s1481_s10 = sshll.u32 %s1704_s4, 4  ;;  %s1482_s10 = int_to_ptr.vmem [resolvable:$true] %s1481_s10 }
   0xd   :  { %1574 = vmatprep.mubr.msk.f32.mxu0 %vm54_vm1, %v36_v12  ;;  %1592 = vmatpush3.msra.mxu1 %v1368_v19  ;;  %v259_v27 = vmul.f32 0.0, %v1842_v25  ;;  %v1848_v30 = vld [vmem:[%s2130_s2] ss:$0 sm:$0xff]  ;;  %v1851_v34 = vsub.s32 %v266_v28, %v268_v29  ;;  %s1615_s12 = scalar_lea.vmem %s1482_s10, 128  ;;  %p1620_p1 = scmp.lt.s32.totalorder %s1482_s10, %s1482_s10 }
   0xe   :  { %1587 = vmatmul.mubr.msk.f32.gmra.mxu1 %vm54_vm1, %v45_v13  ;;  %1593 = vmatprep.subr.mxu1 %v1701_v17  ;;  %p1616_p0 = scmp.ne.s32.totalorder %s1482_s10, %s1615_s12  ;;  %p1621_p2 = scmp.lt.s32.totalorder %s1615_s12, %s1615_s12 }
   0xf   :  { %1594 = vmatpush3.msra.mxu1 %v1367_v20  ;;  %1597 = vmatprep.mubr.msk.f32.mxu1 %vm1702_vm2, %v1701_v17 }
  0x10   :  { %1575 = vmatmul.mubr.msk.f32.gmra.mxu0 %vm54_vm1, %v37_v14  ;;  %1595 = vmatprep.subr.mxu1 %v1701_v17  ;;  %p1622_p3 = por %p1621_p2, %p1620_p1 }
  0x11   :  { %1577 = vmatprep.mubr.msk.f32.mxu0 %vm54_vm1, %v38_v15  ;;  %1596 = vmatpush3.msra.mxu1 %v1366_v21 }
  0x12   :  { %p1623_p4 = pnand %p1622_p3, %p1616_p0 }
  0x14   :  { %1578 = vmatmul.mubr.msk.f32.gmra.mxu0 %vm54_vm1, %v39_v16 }
  0xc4   :  { %v1567_v26 = vpop.f32.mrf.mxu0 }
  0xc5   :  { %v179_v36 = vadd.f32 %v1567_v26, %v1848_v30 }
  0xc6   :  { %v173_v31 = vpop.f32.mrf.mxu0 }
  0xc7   :  { %v174_v32 = vadd.f32 %v1848_v30, %v173_v31 }
  0xc8   :  { %v1570_v40 = vpop.f32.mrf.mxu0 }
  0xc9   :  { %v260_v33 = vadd.f32 %v259_v27, %v174_v32  ;;  %v189_v7 = vadd.f32 %v1570_v40, %v1848_v30 }
  0xca   :  { %v183_v49 = vpop.f32.mrf.mxu0 }
  0xcb   :  { %v261_v35 = vmax.f32 %v260_v33, 0.0  ;;  %v184_v54 = vadd.f32 %v1848_v30, %v183_v49 }
  0xcc   :  { %v1573_v11 = vpop.f32.mrf.mxu0 }
  0xcd   :  { %v263_v37 = vcombine.high %v261_v35, %v261_v35  ;;  %v270_v38 = vrot.slane %v261_v35, %v1851_v34  ;;  %v329_v39 = vmul.f32 %v1842_v25, %v261_v35 }
  0xce   :  { %v193_v21 = vpop.f32.mrf.mxu0 }
  0xcf   :  { %v277_v41 = vrot.slane %v263_v37, %v1851_v34  ;;  %v278_v42 = vcombine.high %v270_v38, %v270_v38  ;;  %v286_v43 = vrot.slane %v270_v38, %v1851_v34  ;;  %v330_v44 = vadd.f32 %v329_v39, %v179_v36 }
  0xd0   :  { %v194_v27 = vadd.f32 %v1848_v30, %v193_v21 }
  0xd1   :  { %v279_v45 = vcombine.high %v277_v41, %v277_v41  ;;  %v293_v46 = vrot.slane %v277_v41, %v1851_v34  ;;  %v300_v47 = vrot.slane %v278_v42, %v1851_v34  ;;  %v308_v48 = vcombine.high %v286_v43, %v286_v43  ;;  %321 = vst.msk [vmem:[#allocation2] sm:$0x1] %vm320_vm3, %v286_v43 }
  0xd2   :  { %v331_v50 = vmax.f32 %v330_v44, 0.0 }
  0xd3   :  { %v307_v51 = vrot.slane %v279_v45, %v1851_v34  ;;  %v309_v52 = vcombine.high %v293_v46, %v293_v46  ;;  %v310_v53 = vcombine.high %v300_v47, %v300_v47  ;;  %322 = vst.msk [vmem:[#allocation2 + $0x10] sm:$0x1] %vm320_vm3, %v300_v47  ;;  %323 = vst.msk [vmem:[#allocation2 + $0x20] sm:$0x1] %vm320_vm3, %v308_v48 }
  0xd4   :  { %325 = vst.msk [vmem:[#allocation2 + $0x40] sm:$0x1] %vm320_vm3, %v293_v46  ;;  %v333_v55 = vcombine.high %v331_v50, %v331_v50  ;;  %v340_v56 = vrot.slane %v331_v50, %v1851_v34  ;;  %v398_v57 = vmul.f32 %v1842_v25, %v331_v50  ;;  %v199_v46 = vadd.f32 %v1573_v11, %v1848_v30  ;;  %v1576_v50 = vpop.f32.mrf.mxu0 }
  0xd5   :  { %v311_v58 = vcombine.high %v307_v51, %v307_v51  ;;  %324 = vst.msk [vmem:[#allocation2 + $0x30] sm:$0x1] %vm320_vm3, %v310_v53  ;;  %326 = vst.msk [vmem:[#allocation2 + $0x50] sm:$0x1] %vm320_vm3, %v307_v51 }
  0xd6   :  { %327 = vst.msk [vmem:[#allocation2 + $0x60] sm:$0x1] %vm320_vm3, %v309_v52  ;;  %v347_v59 = vrot.slane %v333_v55, %v1851_v34  ;;  %v348_v60 = vcombine.high %v340_v56, %v340_v56  ;;  %v356_v61 = vrot.slane %v340_v56, %v1851_v34  ;;  %v399_v62 = vadd.f32 %v398_v57, %v184_v54 }
  0xd7   :  { %328 = vst.msk [vmem:[#allocation2 + $0x70] sm:$0x1] %vm320_vm3, %v311_v58 }
  0xd8   :  { %v349_v63 = vcombine.high %v347_v59, %v347_v59  ;;  %v363_v0 = vrot.slane %v347_v59, %v1851_v34  ;;  %v370_v1 = vrot.slane %v348_v60, %v1851_v34  ;;  %v378_v2 = vcombine.high %v356_v61, %v356_v61  ;;  %390 = vst.msk [vmem:[#allocation2 + $0x1] sm:$0x1] %vm320_vm3, %v356_v61  ;;  %v203_v60 = vpop.f32.mrf.mxu0 }
  0xd9   :  { %v400_v3 = vmax.f32 %v399_v62, 0.0 }
  0xda   :  { %v377_v4 = vrot.slane %v349_v63, %v1851_v34  ;;  %v379_v5 = vcombine.high %v363_v0, %v363_v0  ;;  %v380_v6 = vcombine.high %v370_v1, %v370_v1  ;;  %391 = vst.msk [vmem:[#allocation2 + $0x11] sm:$0x1] %vm320_vm3, %v370_v1  ;;  %392 = vst.msk [vmem:[#allocation2 + $0x21] sm:$0x1] %vm320_vm3, %v378_v2 }
  0xdb   :  { %394 = vst.msk [vmem:[#allocation2 + $0x41] sm:$0x1] %vm320_vm3, %v363_v0  ;;  %v402_v8 = vcombine.high %v400_v3, %v400_v3  ;;  %v409_v9 = vrot.slane %v400_v3, %v1851_v34  ;;  %v467_v10 = vmul.f32 %v1842_v25, %v400_v3  ;;  %v204_v1 = vadd.f32 %v1848_v30, %v203_v60 }
  0xdc   :  { %v381_v12 = vcombine.high %v377_v4, %v377_v4  ;;  %393 = vst.msk [vmem:[#allocation2 + $0x31] sm:$0x1] %vm320_vm3, %v380_v6  ;;  %395 = vst.msk [vmem:[#allocation2 + $0x51] sm:$0x1] %vm320_vm3, %v377_v4 }
  0xdd   :  { %396 = vst.msk [vmem:[#allocation2 + $0x61] sm:$0x1] %vm320_vm3, %v379_v5  ;;  %v416_v13 = vrot.slane %v402_v8, %v1851_v34  ;;  %v417_v14 = vcombine.high %v409_v9, %v409_v9  ;;  %v425_v15 = vrot.slane %v409_v9, %v1851_v34  ;;  %v468_v16 = vadd.f32 %v467_v10, %v189_v7 }
  0xde   :  { %397 = vst.msk [vmem:[#allocation2 + $0x71] sm:$0x1] %vm320_vm3, %v381_v12 }
  0xdf   :  { %v418_v17 = vcombine.high %v416_v13, %v416_v13  ;;  %v432_v18 = vrot.slane %v416_v13, %v1851_v34  ;;  %v439_v19 = vrot.slane %v417_v14, %v1851_v34  ;;  %v447_v20 = vcombine.high %v425_v15, %v425_v15  ;;  %459 = vst.msk [vmem:[#allocation2 + $0x2] sm:$0x1] %vm320_vm3, %v425_v15 }
  0xe0   :  { %v469_v22 = vmax.f32 %v468_v16, 0.0 }
  0xe1   :  { %v446_v23 = vrot.slane %v418_v17, %v1851_v34  ;;  %v448_v24 = vcombine.high %v432_v18, %v432_v18  ;;  %v449_v26 = vcombine.high %v439_v19, %v439_v19  ;;  %460 = vst.msk [vmem:[#allocation2 + $0x12] sm:$0x1] %vm320_vm3, %v439_v19  ;;  %461 = vst.msk [vmem:[#allocation2 + $0x22] sm:$0x1] %vm320_vm3, %v447_v20 }
  0xe2   :  { %463 = vst.msk [vmem:[#allocation2 + $0x42] sm:$0x1] %vm320_vm3, %v432_v18  ;;  %v471_v28 = vcombine.high %v469_v22, %v469_v22  ;;  %v478_v29 = vrot.slane %v469_v22, %v1851_v34  ;;  %v536_v31 = vmul.f32 %v1842_v25, %v469_v22  ;;  %v209_v18 = vadd.f32 %v1576_v50, %v1848_v30  ;;  %v1579_v22 = vpop.f32.mrf.mxu0 }
  0xe3   :  { %v450_v32 = vcombine.high %v446_v23, %v446_v23  ;;  %462 = vst.msk [vmem:[#allocation2 + $0x32] sm:$0x1] %vm320_vm3, %v449_v26  ;;  %464 = vst.msk [vmem:[#allocation2 + $0x52] sm:$0x1] %vm320_vm3, %v446_v23 }
  0xe4   :  { %465 = vst.msk [vmem:[#allocation2 + $0x62] sm:$0x1] %vm320_vm3, %v448_v24  ;;  %v485_v33 = vrot.slane %v471_v28, %v1851_v34  ;;  %v486_v35 = vcombine.high %v478_v29, %v478_v29  ;;  %v494_v36 = vrot.slane %v478_v29, %v1851_v34  ;;  %v537_v37 = vadd.f32 %v536_v31, %v194_v27 }
  0xe5   :  { %466 = vst.msk [vmem:[#allocation2 + $0x72] sm:$0x1] %vm320_vm3, %v450_v32 }
  0xe6   :  { %v487_v38 = vcombine.high %v485_v33, %v485_v33  ;;  %v501_v39 = vrot.slane %v485_v33, %v1851_v34  ;;  %v508_v40 = vrot.slane %v486_v35, %v1851_v34  ;;  %v516_v41 = vcombine.high %v494_v36, %v494_v36  ;;  %528 = vst.msk [vmem:[#allocation2 + $0x3] sm:$0x1] %vm320_vm3, %v494_v36  ;;  %v213_v35 = vpop.f32.mrf.mxu0 }
  0xe7   :  { %v538_v42 = vmax.f32 %v537_v37, 0.0 }
  0xe8   :  { %v515_v43 = vrot.slane %v487_v38, %v1851_v34  ;;  %v517_v44 = vcombine.high %v501_v39, %v501_v39  ;;  %v518_v45 = vcombine.high %v508_v40, %v508_v40  ;;  %529 = vst.msk [vmem:[#allocation2 + $0x13] sm:$0x1] %vm320_vm3, %v508_v40  ;;  %530 = vst.msk [vmem:[#allocation2 + $0x23] sm:$0x1] %vm320_vm3, %v516_v41 }
  0xe9   :  { %532 = vst.msk [vmem:[#allocation2 + $0x43] sm:$0x1] %vm320_vm3, %v501_v39  ;;  %v540_v47 = vcombine.high %v538_v42, %v538_v42  ;;  %v547_v48 = vrot.slane %v538_v42, %v1851_v34  ;;  %v605_v49 = vmul.f32 %v1842_v25, %v538_v42  ;;  %v214_v40 = vadd.f32 %v1848_v30, %v213_v35 }
  0xea   :  { %v519_v51 = vcombine.high %v515_v43, %v515_v43  ;;  %531 = vst.msk [vmem:[#allocation2 + $0x33] sm:$0x1] %vm320_vm3, %v518_v45  ;;  %533 = vst.msk [vmem:[#allocation2 + $0x53] sm:$0x1] %vm320_vm3, %v515_v43 }
  0xeb   :  { %534 = vst.msk [vmem:[#allocation2 + $0x63] sm:$0x1] %vm320_vm3, %v517_v44  ;;  %v554_v52 = vrot.slane %v540_v47, %v1851_v34  ;;  %v555_v53 = vcombine.high %v547_v48, %v547_v48  ;;  %v563_v54 = vrot.slane %v547_v48, %v1851_v34  ;;  %v606_v55 = vadd.f32 %v605_v49, %v199_v46 }
  0xec   :  { %535 = vst.msk [vmem:[#allocation2 + $0x73] sm:$0x1] %vm320_vm3, %v519_v51 }
  0xed   :  { %v556_v56 = vcombine.high %v554_v52, %v554_v52  ;;  %v570_v57 = vrot.slane %v554_v52, %v1851_v34  ;;  %v577_v58 = vrot.slane %v555_v53, %v1851_v34  ;;  %v585_v59 = vcombine.high %v563_v54, %v563_v54  ;;  %597 = vst.msk [vmem:[#allocation2 + $0x4] sm:$0x1] %vm320_vm3, %v563_v54 }
  0xee   :  { %v607_v61 = vmax.f32 %v606_v55, 0.0 }
  0xef   :  { %v584_v62 = vrot.slane %v556_v56, %v1851_v34  ;;  %v586_v63 = vcombine.high %v570_v57, %v570_v57  ;;  %v587_v0 = vcombine.high %v577_v58, %v577_v58  ;;  %598 = vst.msk [vmem:[#allocation2 + $0x14] sm:$0x1] %vm320_vm3, %v577_v58  ;;  %599 = vst.msk [vmem:[#allocation2 + $0x24] sm:$0x1] %vm320_vm3, %v585_v59 }
  0xf0   :  { %601 = vst.msk [vmem:[#allocation2 + $0x44] sm:$0x1] %vm320_vm3, %v570_v57  ;;  %v609_v2 = vcombine.high %v607_v61, %v607_v61  ;;  %v616_v3 = vrot.slane %v607_v61, %v1851_v34  ;;  %v674_v4 = vmul.f32 %v1842_v25, %v607_v61  ;;  %v219_v57 = vadd.f32 %v1579_v22, %v1848_v30  ;;  %v1582_v61 = vpop.f32.mrf.mxu1 }
  0xf1   :  { %v588_v5 = vcombine.high %v584_v62, %v584_v62  ;;  %600 = vst.msk [vmem:[#allocation2 + $0x34] sm:$0x1] %vm320_vm3, %v587_v0  ;;  %602 = vst.msk [vmem:[#allocation2 + $0x54] sm:$0x1] %vm320_vm3, %v584_v62 }
  0xf2   :  { %603 = vst.msk [vmem:[#allocation2 + $0x64] sm:$0x1] %vm320_vm3, %v586_v63  ;;  %v623_v6 = vrot.slane %v609_v2, %v1851_v34  ;;  %v624_v7 = vcombine.high %v616_v3, %v616_v3  ;;  %v632_v8 = vrot.slane %v616_v3, %v1851_v34  ;;  %v675_v9 = vadd.f32 %v674_v4, %v204_v1 }
  0xf3   :  { %604 = vst.msk [vmem:[#allocation2 + $0x74] sm:$0x1] %vm320_vm3, %v588_v5 }
  0xf4   :  { %v625_v10 = vcombine.high %v623_v6, %v623_v6  ;;  %v639_v11 = vrot.slane %v623_v6, %v1851_v34  ;;  %v646_v12 = vrot.slane %v624_v7, %v1851_v34  ;;  %v654_v13 = vcombine.high %v632_v8, %v632_v8  ;;  %666 = vst.msk [vmem:[#allocation2 + $0x5] sm:$0x1] %vm320_vm3, %v632_v8  ;;  %v223_v7 = vpop.f32.mrf.mxu1 }
  0xf5   :  { %v676_v14 = vmax.f32 %v675_v9, 0.0 }
  0xf6   :  { %v653_v15 = vrot.slane %v625_v10, %v1851_v34  ;;  %v655_v16 = vcombine.high %v639_v11, %v639_v11  ;;  %v656_v17 = vcombine.high %v646_v12, %v646_v12  ;;  %667 = vst.msk [vmem:[#allocation2 + $0x15] sm:$0x1] %vm320_vm3, %v646_v12  ;;  %668 = vst.msk [vmem:[#allocation2 + $0x25] sm:$0x1] %vm320_vm3, %v654_v13 }
  0xf7   :  { %670 = vst.msk [vmem:[#allocation2 + $0x45] sm:$0x1] %vm320_vm3, %v639_v11  ;;  %v678_v19 = vcombine.high %v676_v14, %v676_v14  ;;  %v685_v20 = vrot.slane %v676_v14, %v1851_v34  ;;  %v743_v21 = vmul.f32 %v1842_v25, %v676_v14  ;;  %v224_v12 = vadd.f32 %v1848_v30, %v223_v7 }
  0xf8   :  { %v657_v23 = vcombine.high %v653_v15, %v653_v15  ;;  %669 = vst.msk [vmem:[#allocation2 + $0x35] sm:$0x1] %vm320_vm3, %v656_v17  ;;  %671 = vst.msk [vmem:[#allocation2 + $0x55] sm:$0x1] %vm320_vm3, %v653_v15 }
  0xf9   :  { %672 = vst.msk [vmem:[#allocation2 + $0x65] sm:$0x1] %vm320_vm3, %v655_v16  ;;  %v692_v24 = vrot.slane %v678_v19, %v1851_v34  ;;  %v693_v26 = vcombine.high %v685_v20, %v685_v20  ;;  %v701_v27 = vrot.slane %v685_v20, %v1851_v34  ;;  %v744_v28 = vadd.f32 %v743_v21, %v209_v18 }
  0xfa   :  { %673 = vst.msk [vmem:[#allocation2 + $0x75] sm:$0x1] %vm320_vm3, %v657_v23 }
  0xfb   :  { %v694_v29 = vcombine.high %v692_v24, %v692_v24  ;;  %v708_v31 = vrot.slane %v692_v24, %v1851_v34  ;;  %v715_v32 = vrot.slane %v693_v26, %v1851_v34  ;;  %v723_v33 = vcombine.high %v701_v27, %v701_v27  ;;  %735 = vst.msk [vmem:[#allocation2 + $0x6] sm:$0x1] %vm320_vm3, %v701_v27 }
  0xfc   :  { %v745_v36 = vmax.f32 %v744_v28, 0.0 }
  0xfd   :  { %v722_v37 = vrot.slane %v694_v29, %v1851_v34  ;;  %v724_v38 = vcombine.high %v708_v31, %v708_v31  ;;  %v725_v39 = vcombine.high %v715_v32, %v715_v32  ;;  %736 = vst.msk [vmem:[#allocation2 + $0x16] sm:$0x1] %vm320_vm3, %v715_v32  ;;  %737 = vst.msk [vmem:[#allocation2 + $0x26] sm:$0x1] %vm320_vm3, %v723_v33 }
  0xfe   :  { %739 = vst.msk [vmem:[#allocation2 + $0x46] sm:$0x1] %vm320_vm3, %v708_v31  ;;  %v747_v41 = vcombine.high %v745_v36, %v745_v36  ;;  %v754_v42 = vrot.slane %v745_v36, %v1851_v34  ;;  %v812_v43 = vmul.f32 %v1842_v25, %v745_v36  ;;  %v229_v31 = vadd.f32 %v1582_v61, %v1848_v30  ;;  %v1585_v36 = vpop.f32.mrf.mxu1 }
  0xff   :  { %v726_v44 = vcombine.high %v722_v37, %v722_v37  ;;  %738 = vst.msk [vmem:[#allocation2 + $0x36] sm:$0x1] %vm320_vm3, %v725_v39  ;;  %740 = vst.msk [vmem:[#allocation2 + $0x56] sm:$0x1] %vm320_vm3, %v722_v37 }
 0x100   :  { %741 = vst.msk [vmem:[#allocation2 + $0x66] sm:$0x1] %vm320_vm3, %v724_v38  ;;  %v761_v45 = vrot.slane %v747_v41, %v1851_v34  ;;  %v762_v46 = vcombine.high %v754_v42, %v754_v42  ;;  %v770_v47 = vrot.slane %v754_v42, %v1851_v34  ;;  %v813_v48 = vadd.f32 %v812_v43, %v214_v40 }
 0x101   :  { %742 = vst.msk [vmem:[#allocation2 + $0x76] sm:$0x1] %vm320_vm3, %v726_v44 }
 0x102   :  { %v763_v49 = vcombine.high %v761_v45, %v761_v45  ;;  %v777_v50 = vrot.slane %v761_v45, %v1851_v34  ;;  %v784_v51 = vrot.slane %v762_v46, %v1851_v34  ;;  %v792_v52 = vcombine.high %v770_v47, %v770_v47  ;;  %804 = vst.msk [vmem:[#allocation2 + $0x7] sm:$0x1] %vm320_vm3, %v770_v47  ;;  %v233_v46 = vpop.f32.mrf.mxu1 }
 0x103   :  { %v814_v53 = vmax.f32 %v813_v48, 0.0 }
 0x104   :  { %v791_v54 = vrot.slane %v763_v49, %v1851_v34  ;;  %v793_v55 = vcombine.high %v777_v50, %v777_v50  ;;  %v794_v56 = vcombine.high %v784_v51, %v784_v51  ;;  %805 = vst.msk [vmem:[#allocation2 + $0x17] sm:$0x1] %vm320_vm3, %v784_v51  ;;  %806 = vst.msk [vmem:[#allocation2 + $0x27] sm:$0x1] %vm320_vm3, %v792_v52 }
 0x105   :  { %808 = vst.msk [vmem:[#allocation2 + $0x47] sm:$0x1] %vm320_vm3, %v777_v50  ;;  %v816_v58 = vcombine.high %v814_v53, %v814_v53  ;;  %v823_v59 = vrot.slane %v814_v53, %v1851_v34  ;;  %v881_v60 = vmul.f32 %v1842_v25, %v814_v53  ;;  %v234_v51 = vadd.f32 %v1848_v30, %v233_v46 }
 0x106   :  { %v795_v62 = vcombine.high %v791_v54, %v791_v54  ;;  %807 = vst.msk [vmem:[#allocation2 + $0x37] sm:$0x1] %vm320_vm3, %v794_v56  ;;  %809 = vst.msk [vmem:[#allocation2 + $0x57] sm:$0x1] %vm320_vm3, %v791_v54 }
 0x107   :  { %810 = vst.msk [vmem:[#allocation2 + $0x67] sm:$0x1] %vm320_vm3, %v793_v55  ;;  %v830_v63 = vrot.slane %v816_v58, %v1851_v34  ;;  %v831_v0 = vcombine.high %v823_v59, %v823_v59  ;;  %v839_v1 = vrot.slane %v823_v59, %v1851_v34  ;;  %v882_v2 = vadd.f32 %v881_v60, %v219_v57 }
 0x108   :  { %811 = vst.msk [vmem:[#allocation2 + $0x77] sm:$0x1] %vm320_vm3, %v795_v62 }
 0x109   :  { %v832_v3 = vcombine.high %v830_v63, %v830_v63  ;;  %v846_v4 = vrot.slane %v830_v63, %v1851_v34  ;;  %v853_v5 = vrot.slane %v831_v0, %v1851_v34  ;;  %v861_v6 = vcombine.high %v839_v1, %v839_v1  ;;  %873 = vst.msk [vmem:[#allocation2 + $0x8] sm:$0x1] %vm320_vm3, %v839_v1 }
 0x10a   :  { %v883_v8 = vmax.f32 %v882_v2, 0.0 }
 0x10b   :  { %v860_v9 = vrot.slane %v832_v3, %v1851_v34  ;;  %v862_v10 = vcombine.high %v846_v4, %v846_v4  ;;  %v863_v11 = vcombine.high %v853_v5, %v853_v5  ;;  %874 = vst.msk [vmem:[#allocation2 + $0x18] sm:$0x1] %vm320_vm3, %v853_v5  ;;  %875 = vst.msk [vmem:[#allocation2 + $0x28] sm:$0x1] %vm320_vm3, %v861_v6 }
 0x10c   :  { %877 = vst.msk [vmem:[#allocation2 + $0x48] sm:$0x1] %vm320_vm3, %v846_v4  ;;  %v885_v13 = vcombine.high %v883_v8, %v883_v8  ;;  %v892_v14 = vrot.slane %v883_v8, %v1851_v34  ;;  %v950_v15 = vmul.f32 %v1842_v25, %v883_v8  ;;  %v239_v4 = vadd.f32 %v1585_v36, %v1848_v30  ;;  %v1588_v8 = vpop.f32.mrf.mxu1 }
 0x10d   :  { %v864_v16 = vcombine.high %v860_v9, %v860_v9  ;;  %876 = vst.msk [vmem:[#allocation2 + $0x38] sm:$0x1] %vm320_vm3, %v863_v11  ;;  %878 = vst.msk [vmem:[#allocation2 + $0x58] sm:$0x1] %vm320_vm3, %v860_v9 }
 0x10e   :  { %879 = vst.msk [vmem:[#allocation2 + $0x68] sm:$0x1] %vm320_vm3, %v862_v10  ;;  %v899_v17 = vrot.slane %v885_v13, %v1851_v34  ;;  %v900_v18 = vcombine.high %v892_v14, %v892_v14  ;;  %v908_v19 = vrot.slane %v892_v14, %v1851_v34  ;;  %v951_v20 = vadd.f32 %v950_v15, %v224_v12 }
 0x10f   :  { %880 = vst.msk [vmem:[#allocation2 + $0x78] sm:$0x1] %vm320_vm3, %v864_v16 }
 0x110   :  { %v901_v21 = vcombine.high %v899_v17, %v899_v17  ;;  %v915_v22 = vrot.slane %v899_v17, %v1851_v34  ;;  %v922_v23 = vrot.slane %v900_v18, %v1851_v34  ;;  %v930_v24 = vcombine.high %v908_v19, %v908_v19  ;;  %942 = vst.msk [vmem:[#allocation2 + $0x9] sm:$0x1] %vm320_vm3, %v908_v19  ;;  %v243_v18 = vpop.f32.mrf.mxu1 }
 0x111   :  { %v952_v26 = vmax.f32 %v951_v20, 0.0 }
 0x112   :  { %v929_v27 = vrot.slane %v901_v21, %v1851_v34  ;;  %v931_v28 = vcombine.high %v915_v22, %v915_v22  ;;  %v932_v29 = vcombine.high %v922_v23, %v922_v23  ;;  %943 = vst.msk [vmem:[#allocation2 + $0x19] sm:$0x1] %vm320_vm3, %v922_v23  ;;  %944 = vst.msk [vmem:[#allocation2 + $0x29] sm:$0x1] %vm320_vm3, %v930_v24 }
 0x113   :  { %946 = vst.msk [vmem:[#allocation2 + $0x49] sm:$0x1] %vm320_vm3, %v915_v22  ;;  %v954_v32 = vcombine.high %v952_v26, %v952_v26  ;;  %v961_v33 = vrot.slane %v952_v26, %v1851_v34  ;;  %v1019_v35 = vmul.f32 %v1842_v25, %v952_v26  ;;  %v244_v23 = vadd.f32 %v1848_v30, %v243_v18 }
 0x114   :  { %v933_v37 = vcombine.high %v929_v27, %v929_v27  ;;  %945 = vst.msk [vmem:[#allocation2 + $0x39] sm:$0x1] %vm320_vm3, %v932_v29  ;;  %947 = vst.msk [vmem:[#allocation2 + $0x59] sm:$0x1] %vm320_vm3, %v929_v27 }
 0x115   :  { %948 = vst.msk [vmem:[#allocation2 + $0x69] sm:$0x1] %vm320_vm3, %v931_v28  ;;  %v968_v38 = vrot.slane %v954_v32, %v1851_v34  ;;  %v969_v39 = vcombine.high %v961_v33, %v961_v33  ;;  %v977_v40 = vrot.slane %v961_v33, %v1851_v34  ;;  %v1020_v41 = vadd.f32 %v1019_v35, %v229_v31 }
 0x116   :  { %949 = vst.msk [vmem:[#allocation2 + $0x79] sm:$0x1] %vm320_vm3, %v933_v37 }
 0x117   :  { %v970_v42 = vcombine.high %v968_v38, %v968_v38  ;;  %v984_v43 = vrot.slane %v968_v38, %v1851_v34  ;;  %v991_v44 = vrot.slane %v969_v39, %v1851_v34  ;;  %v999_v45 = vcombine.high %v977_v40, %v977_v40  ;;  %1011 = vst.msk [vmem:[#allocation2 + $0xa] sm:$0x1] %vm320_vm3, %v977_v40 }
 0x118   :  { %v1021_v47 = vmax.f32 %v1020_v41, 0.0 }
 0x119   :  { %v998_v48 = vrot.slane %v970_v42, %v1851_v34  ;;  %v1000_v49 = vcombine.high %v984_v43, %v984_v43  ;;  %v1001_v50 = vcombine.high %v991_v44, %v991_v44  ;;  %1012 = vst.msk [vmem:[#allocation2 + $0x1a] sm:$0x1] %vm320_vm3, %v991_v44  ;;  %1013 = vst.msk [vmem:[#allocation2 + $0x2a] sm:$0x1] %vm320_vm3, %v999_v45 }
 0x11a   :  { %1015 = vst.msk [vmem:[#allocation2 + $0x4a] sm:$0x1] %vm320_vm3, %v984_v43  ;;  %v1023_v52 = vcombine.high %v1021_v47, %v1021_v47  ;;  %v1030_v53 = vrot.slane %v1021_v47, %v1851_v34  ;;  %v1088_v54 = vmul.f32 %v1842_v25, %v1021_v47  ;;  %v249_v43 = vadd.f32 %v1588_v8, %v1848_v30 }
 0x11b   :  { %v1002_v55 = vcombine.high %v998_v48, %v998_v48  ;;  %1014 = vst.msk [vmem:[#allocation2 + $0x3a] sm:$0x1] %vm320_vm3, %v1001_v50  ;;  %1016 = vst.msk [vmem:[#allocation2 + $0x5a] sm:$0x1] %vm320_vm3, %v998_v48 }
 0x11c   :  { %1017 = vst.msk [vmem:[#allocation2 + $0x6a] sm:$0x1] %vm320_vm3, %v1000_v49  ;;  %v1037_v56 = vrot.slane %v1023_v52, %v1851_v34  ;;  %v1038_v57 = vcombine.high %v1030_v53, %v1030_v53  ;;  %v1046_v58 = vrot.slane %v1030_v53, %v1851_v34  ;;  %v1089_v59 = vadd.f32 %v1088_v54, %v234_v51 }
 0x11d   :  { %1018 = vst.msk [vmem:[#allocation2 + $0x7a] sm:$0x1] %vm320_vm3, %v1002_v55 }
 0x11e   :  { %v1039_v60 = vcombine.high %v1037_v56, %v1037_v56  ;;  %v1053_v61 = vrot.slane %v1037_v56, %v1851_v34  ;;  %v1060_v62 = vrot.slane %v1038_v57, %v1851_v34  ;;  %v1068_v63 = vcombine.high %v1046_v58, %v1046_v58  ;;  %1080 = vst.msk [vmem:[#allocation2 + $0xb] sm:$0x1] %vm320_vm3, %v1046_v58 }
 0x11f   :  { %v1090_v0 = vmax.f32 %v1089_v59, 0.0 }
 0x120   :  { %v1067_v1 = vrot.slane %v1039_v60, %v1851_v34  ;;  %v1069_v2 = vcombine.high %v1053_v61, %v1053_v61  ;;  %v1070_v3 = vcombine.high %v1060_v62, %v1060_v62  ;;  %1081 = vst.msk [vmem:[#allocation2 + $0x1b] sm:$0x1] %vm320_vm3, %v1060_v62  ;;  %1082 = vst.msk [vmem:[#allocation2 + $0x2b] sm:$0x1] %vm320_vm3, %v1068_v63 }
 0x121   :  { %1084 = vst.msk [vmem:[#allocation2 + $0x4b] sm:$0x1] %vm320_vm3, %v1053_v61  ;;  %v1092_v5 = vcombine.high %v1090_v0, %v1090_v0  ;;  %v1099_v6 = vrot.slane %v1090_v0, %v1851_v34  ;;  %v1157_v7 = vmul.f32 %v1842_v25, %v1090_v0 }
 0x122   :  { %v1071_v9 = vcombine.high %v1067_v1, %v1067_v1  ;;  %1083 = vst.msk [vmem:[#allocation2 + $0x3b] sm:$0x1] %vm320_vm3, %v1070_v3  ;;  %1085 = vst.msk [vmem:[#allocation2 + $0x5b] sm:$0x1] %vm320_vm3, %v1067_v1 }
 0x123   :  { %1086 = vst.msk [vmem:[#allocation2 + $0x6b] sm:$0x1] %vm320_vm3, %v1069_v2  ;;  %v1106_v10 = vrot.slane %v1092_v5, %v1851_v34  ;;  %v1107_v11 = vcombine.high %v1099_v6, %v1099_v6  ;;  %v1115_v12 = vrot.slane %v1099_v6, %v1851_v34  ;;  %v1158_v13 = vadd.f32 %v1157_v7, %v239_v4 }
 0x124   :  { %1087 = vst.msk [vmem:[#allocation2 + $0x7b] sm:$0x1] %vm320_vm3, %v1071_v9 }
 0x125   :  { %v1108_v14 = vcombine.high %v1106_v10, %v1106_v10  ;;  %v1122_v15 = vrot.slane %v1106_v10, %v1851_v34  ;;  %v1129_v16 = vrot.slane %v1107_v11, %v1851_v34  ;;  %v1137_v17 = vcombine.high %v1115_v12, %v1115_v12  ;;  %1149 = vst.msk [vmem:[#allocation2 + $0xc] sm:$0x1] %vm320_vm3, %v1115_v12 }
 0x126   :  { %v1159_v19 = vmax.f32 %v1158_v13, 0.0 }
 0x127   :  { %v1136_v20 = vrot.slane %v1108_v14, %v1851_v34  ;;  %v1138_v21 = vcombine.high %v1122_v15, %v1122_v15  ;;  %v1139_v22 = vcombine.high %v1129_v16, %v1129_v16  ;;  %1150 = vst.msk [vmem:[#allocation2 + $0x1c] sm:$0x1] %vm320_vm3, %v1129_v16  ;;  %1151 = vst.msk [vmem:[#allocation2 + $0x2c] sm:$0x1] %vm320_vm3, %v1137_v17 }
 0x128   :  { %1153 = vst.msk [vmem:[#allocation2 + $0x4c] sm:$0x1] %vm320_vm3, %v1122_v15  ;;  %v1161_v24 = vcombine.high %v1159_v19, %v1159_v19  ;;  %v1168_v26 = vrot.slane %v1159_v19, %v1851_v34  ;;  %v1226_v27 = vmul.f32 %v1842_v25, %v1159_v19 }
 0x129   :  { %v1140_v28 = vcombine.high %v1136_v20, %v1136_v20  ;;  %1152 = vst.msk [vmem:[#allocation2 + $0x3c] sm:$0x1] %vm320_vm3, %v1139_v22  ;;  %1154 = vst.msk [vmem:[#allocation2 + $0x5c] sm:$0x1] %vm320_vm3, %v1136_v20 }
 0x12a   :  { %1155 = vst.msk [vmem:[#allocation2 + $0x6c] sm:$0x1] %vm320_vm3, %v1138_v21  ;;  %v1175_v29 = vrot.slane %v1161_v24, %v1851_v34  ;;  %v1176_v31 = vcombine.high %v1168_v26, %v1168_v26  ;;  %v1184_v32 = vrot.slane %v1168_v26, %v1851_v34  ;;  %v1227_v33 = vadd.f32 %v1226_v27, %v244_v23 }
 0x12b   :  { %1156 = vst.msk [vmem:[#allocation2 + $0x7c] sm:$0x1] %vm320_vm3, %v1140_v28 }
 0x12c   :  { %v1177_v35 = vcombine.high %v1175_v29, %v1175_v29  ;;  %v1191_v36 = vrot.slane %v1175_v29, %v1851_v34  ;;  %v1198_v37 = vrot.slane %v1176_v31, %v1851_v34  ;;  %v1206_v38 = vcombine.high %v1184_v32, %v1184_v32  ;;  %1218 = vst.msk [vmem:[#allocation2 + $0xd] sm:$0x1] %vm320_vm3, %v1184_v32 }
 0x12d   :  { %v1228_v39 = vmax.f32 %v1227_v33, 0.0 }
 0x12e   :  { %v1205_v40 = vrot.slane %v1177_v35, %v1851_v34  ;;  %v1207_v41 = vcombine.high %v1191_v36, %v1191_v36  ;;  %v1208_v42 = vcombine.high %v1198_v37, %v1198_v37  ;;  %1219 = vst.msk [vmem:[#allocation2 + $0x1d] sm:$0x1] %vm320_vm3, %v1198_v37  ;;  %1220 = vst.msk [vmem:[#allocation2 + $0x2d] sm:$0x1] %vm320_vm3, %v1206_v38 }
 0x12f   :  { %1222 = vst.msk [vmem:[#allocation2 + $0x4d] sm:$0x1] %vm320_vm3, %v1191_v36  ;;  %v1230_v44 = vcombine.high %v1228_v39, %v1228_v39  ;;  %v1237_v45 = vrot.slane %v1228_v39, %v1851_v34  ;;  %v1295_v46 = vmul.f32 %v1842_v25, %v1228_v39 }
 0x130   :  { %v1209_v47 = vcombine.high %v1205_v40, %v1205_v40  ;;  %1221 = vst.msk [vmem:[#allocation2 + $0x3d] sm:$0x1] %vm320_vm3, %v1208_v42  ;;  %1223 = vst.msk [vmem:[#allocation2 + $0x5d] sm:$0x1] %vm320_vm3, %v1205_v40 }
 0x131   :  { %1224 = vst.msk [vmem:[#allocation2 + $0x6d] sm:$0x1] %vm320_vm3, %v1207_v41  ;;  %v1244_v48 = vrot.slane %v1230_v44, %v1851_v34  ;;  %v1245_v49 = vcombine.high %v1237_v45, %v1237_v45  ;;  %v1253_v50 = vrot.slane %v1237_v45, %v1851_v34  ;;  %v1296_v51 = vadd.f32 %v1295_v46, %v249_v43 }
 0x132   :  { %1225 = vst.msk [vmem:[#allocation2 + $0x7d] sm:$0x1] %vm320_vm3, %v1209_v47 }
 0x133   :  { %v1246_v30 = vcombine.high %v1244_v48, %v1244_v48  ;;  %v1260_v52 = vrot.slane %v1244_v48, %v1851_v34  ;;  %v1267_v25 = vrot.slane %v1245_v49, %v1851_v34  ;;  %v1275_v53 = vcombine.high %v1253_v50, %v1253_v50  ;;  %1287 = vst.msk [vmem:[#allocation2 + $0xe] sm:$0x1] %vm320_vm3, %v1253_v50 }
 0x134   :  { %v1297_v54 = vmax.f32 %v1296_v51, 0.0 }
 0x135   :  { %v1274_v55 = vrot.slane %v1246_v30, %v1851_v34  ;;  %v1276_v56 = vcombine.high %v1260_v52, %v1260_v52  ;;  %v1277_v57 = vcombine.high %v1267_v25, %v1267_v25  ;;  %1288 = vst.msk [vmem:[#allocation2 + $0x1e] sm:$0x1] %vm320_vm3, %v1267_v25  ;;  %1289 = vst.msk [vmem:[#allocation2 + $0x2e] sm:$0x1] %vm320_vm3, %v1275_v53 }
 0x136   :  { %1291 = vst.msk [vmem:[#allocation2 + $0x4e] sm:$0x1] %vm320_vm3, %v1260_v52  ;;  %v1299_v58 = vcombine.high %v1297_v54, %v1297_v54  ;;  %v1306_v59 = vrot.slane %v1297_v54, %v1851_v34  ;;  %1598 = vmatmul.mubr.msk.f32.vlgmr.msra.gmra.mxu1 %vm1364_vm4, %v1297_v54 }
 0x137   :  { %1365 = vst.msk [vmem:[#allocation4] sm:$0xff] %vm1364_vm4, %v1297_v54  ;;  %v1278_v60 = vcombine.high %v1274_v55, %v1274_v55 }
 0x138   :  { %1290 = vst.msk [vmem:[#allocation2 + $0x3e] sm:$0x1] %vm320_vm3, %v1277_v57  ;;  %1292 = vst.msk [vmem:[#allocation2 + $0x5e] sm:$0x1] %vm320_vm3, %v1274_v55  ;;  %v1313_v61 = vrot.slane %v1299_v58, %v1851_v34  ;;  %v1314_v62 = vcombine.high %v1306_v59, %v1306_v59  ;;  %v1322_v63 = vrot.slane %v1306_v59, %v1851_v34 }
 0x139   :  { %1293 = vst.msk [vmem:[#allocation2 + $0x6e] sm:$0x1] %vm320_vm3, %v1276_v56  ;;  %1294 = vst.msk [vmem:[#allocation2 + $0x7e] sm:$0x1] %vm320_vm3, %v1278_v60 }
 0x13a   :  { %v1315_v0 = vcombine.high %v1313_v61, %v1313_v61  ;;  %v1329_v1 = vrot.slane %v1313_v61, %v1851_v34  ;;  %v1336_v2 = vrot.slane %v1314_v62, %v1851_v34  ;;  %v1344_v3 = vcombine.high %v1322_v63, %v1322_v63  ;;  %1356 = vst.msk [vmem:[#allocation2 + $0xf] sm:$0x1] %vm320_vm3, %v1322_v63 }
 0x13c   :  { %v1343_v4 = vrot.slane %v1315_v0, %v1851_v34  ;;  %v1345_v5 = vcombine.high %v1329_v1, %v1329_v1  ;;  %v1346_v6 = vcombine.high %v1336_v2, %v1336_v2  ;;  %1357 = vst.msk [vmem:[#allocation2 + $0x1f] sm:$0x1] %vm320_vm3, %v1336_v2  ;;  %1358 = vst.msk [vmem:[#allocation2 + $0x2f] sm:$0x1] %vm320_vm3, %v1344_v3  ;;  %v1539_v34 = vld [vmem:[%s2133_s5] ss:$0 sm:$0xff] }
 0x13d   :  { %1360 = vst.msk [vmem:[#allocation2 + $0x4f] sm:$0x1] %vm320_vm3, %v1329_v1  ;;  %s1705_s5 = smov [#allocation2]  }
 0x13e   :  { %v1347_v7 = vcombine.high %v1343_v4, %v1343_v4  ;;  %1359 = vst.msk [vmem:[#allocation2 + $0x3f] sm:$0x1] %vm320_vm3, %v1346_v6  ;;  %1361 = vst.msk [vmem:[#allocation2 + $0x5f] sm:$0x1] %vm320_vm3, %v1343_v4  ;;  %s1468_s11 = sshll.u32 %s1705_s5, 4  ;;  %s1469_s11 = int_to_ptr.vmem [resolvable:$true] %s1468_s11 }
 0x13f   :  { %1362 = vst.msk [vmem:[#allocation2 + $0x6f] sm:$0x1] %vm320_vm3, %v1345_v5 }
 0x140   :  { %1363 = vst.msk [vmem:[#allocation2 + $0x7f] sm:$0x1] %vm320_vm3, %v1347_v7 }
 0x1f6   :  { %v1445_v8 = vpop.f32.mrf.mxu1 }
 0x1f7   :  { %v1446_v9 = vadd.f32 %v1539_v34, %v1445_v8 }
 0x1f8   :  { %v1599_v10 = vpop.f32.mrf.mxu1 }
 0x1f9   :  { %v1451_v11 = vsel %vm1449_vm5, %v1446_v9, -inf  ;;  %1450 = vst.msk [vmem:[#allocation6] sm:$0xff] %vm1449_vm5, %v1446_v9 }
 0x1fa   :  { %1452 = vmax.xlane.f32.xlu0 %v1451_v11 }
 0x283   :  { %v1453_v12 = vpop.xlane.xlu0 %1452 }
 0x284   :  { %v1454_v13 = vsub.f32 %v1446_v9, %v1453_v12 }
 0x286   :  { %v1455_v14 = vmul.f32 1.442695, %v1454_v13 }
 0x288   :  { %1611 = vpow2.f32 %v1455_v14 }
 0x295   :  { %v1612_v15 = vpop.eup %1611 }
 0x296   :  { %v1457_v16 = vsel %vm1449_vm5, %v1612_v15, 0.0 }
 0x297   :  { %1458 = vadd.xlane.f32.xlu0 %v1457_v16 }
 0x298   :  { %1626 = shalt.err (!%p1623_p4)
}
 0x299   :  { %1484 = dma.vmem_to_hbm [thread:$0]  %s1482_s10, 128, %s2135_s7, [#allocation5]  }
 0x29a   :  { %s1635_s15 = scalar_lea.vmem %s1469_s11, 2048  ;;  %p1640_p6 = scmp.lt.s32.totalorder %s1469_s11, %s1469_s11 }
 0x29b   :  { %p1636_p5 = scmp.ne.s32.totalorder %s1469_s11, %s1635_s15  ;;  %p1641_p7 = scmp.lt.s32.totalorder %s1635_s15, %s1635_s15 }
 0x29d   :  { %p1642_p8 = por %p1641_p7, %p1640_p6 }
 0x29f   :  { %p1643_p9 = pnand %p1642_p8, %p1636_p5 }
 0x2a1   :  { %1646 = shalt.err (!%p1643_p9)
}
 0x2a2   :  { %s1706_s16 = smov 128   ;;  %s1707_s1 = smov 8  }
 0x2a3   :  { %1474 = dma.vmem_to_hbm [thread:$0]  %s1469_s11, 2048, %s2134_s6, [#allocation3], %s1706_s16, %s1706_s16, %s1707_s1  }
 0x2a4   :  { %s1708_s19 = smov [#allocation6]  }
 0x2a5   :  { %s1491_s20 = sshll.u32 %s1708_s19, 4  ;;  %s1492_s20 = int_to_ptr.vmem [resolvable:$true] %s1491_s20 }
 0x2a6   :  { %s1655_s21 = scalar_lea.vmem %s1492_s20, 128  ;;  %p1660_p11 = scmp.lt.s32.totalorder %s1492_s20, %s1492_s20 }
 0x2a7   :  { %p1656_p10 = scmp.ne.s32.totalorder %s1492_s20, %s1655_s21  ;;  %p1661_p12 = scmp.lt.s32.totalorder %s1655_s21, %s1655_s21 }
 0x2a9   :  { %p1662_p13 = por %p1661_p12, %p1660_p11 }
 0x2ab   :  { %p1663_p0 = pnand %p1662_p13, %p1656_p10 }
 0x2ad   :  { %1666 = shalt.err (!%p1663_p0)
}
 0x2ae   :  { %1494 = dma.vmem_to_hbm [thread:$0]  %s1492_s20, 128, %s2136_s8, [#allocation5]  }
 0x2af   :  { %s1709_s23 = smov [#allocation7]  }
 0x2b0   :  { %s1501_s24 = sshll.u32 %s1709_s23, 4  ;;  %s1502_s24 = int_to_ptr.vmem [resolvable:$true] %s1501_s24 }
 0x2b1   :  { %s1675_s6 = scalar_lea.vmem %s1502_s24, 128  ;;  %p1680_p2 = scmp.lt.s32.totalorder %s1502_s24, %s1502_s24 }
 0x2b2   :  { %p1676_p1 = scmp.ne.s32.totalorder %s1502_s24, %s1675_s6  ;;  %p1681_p3 = scmp.lt.s32.totalorder %s1675_s6, %s1675_s6 }
 0x2b4   :  { %p1682_p4 = por %p1681_p3, %p1680_p2 }
 0x2b6   :  { %p1683_p5 = pnand %p1682_p4, %p1676_p1 }
 0x320   :  { %v1459_v17 = vpop.xlane.xlu0 %1458 }
 0x321   :  { %1613 = vrcp.f32 %v1459_v17 }
 0x32e   :  { %v1614_v18 = vpop.eup %1613 }
 0x32f   :  { %v1461_v19 = vmul.f32 %v1614_v18, %v1612_v15 }
 0x331   :  { %1462 = vst.msk [vmem:[#allocation7] sm:$0xff] %vm1449_vm5, %v1461_v19 }
 0x332   :  { %1686 = shalt.err (!%p1683_p5)
}
 0x333   :  { %1504 = dma.vmem_to_hbm [thread:$0]  %s1502_s24, 128, %s2137_s9, [#allocation8]  }
 0x334   :  { %1695 = dma.done.wait [#allocation3], 2048  }
 0x335   :  { %1696 = vsyncadd [#allocation3], 4294965248 }
 0x336   :  { %1697 = dma.done.wait [#allocation5], 256  }
 0x337   :  { %1698 = vsyncadd [#allocation5], 4294967040 }
 0x338   :  { %1699 = dma.done.wait [#allocation8], 128  }
 0x339   :  { %1700 = vsyncadd [#allocation8], 4294967168 }
 0x33a   :  { %1517 = vsyncpa [#allocation3], 1 }
 0x33b   :  { %1518 = vsyncpa [#allocation5], 1 }
 0x33c   :  { %1519 = vsyncpa [#allocation8], 1 }

</bundles_post_ra>
